<compile_context>
chip_gen: v7x
topology: tpu7x:2x2x1
jax: 0.10.0
libtpu: 0.0.40
codegen_flags: <defaults>
</compile_context>

<pallas_src>
import math

import jax
import jax.numpy as jnp
from jax.experimental import pallas as pl
from jax.experimental.pallas import tpu as pltpu

# ---- small ModelArgs-consistent hyper-parameters ----
DIM = 32
N_HEADS = 4
HEAD_DIM = DIM // N_HEADS              # 8
MULTIPLE_OF = 16
NORM_EPS = 1e-5
# FeedForward hidden dim exactly as in the PyTorch FeedForward.__init__
_hidden = int(2 * (4 * DIM) / 3)
FFN_HIDDEN = MULTIPLE_OF * ((_hidden + MULTIPLE_OF - 1) // MULTIPLE_OF)   # 96


def transformer_block_kernel(x_ref, rope_ref, mask_ref, norms_ref,
                             wqkv_ref, wo_ref, w13_ref, w2_ref, out_ref):
    x = x_ref[...].astype(jnp.float32)                        # (T, D), T = B*S flattened tokens
    two_d = 2 * DIM

    # ---- attention RMSNorm (f32 elementwise) ----
    xn = (x * jax.lax.rsqrt(jnp.mean(x * x, axis=-1, keepdims=True) + NORM_EPS)
          * norms_ref[0:1, :])

    # ---- fused Q|K|V projection: one (D, 3D) MXU pass ----
    qkv = jnp.dot(xn.astype(jnp.bfloat16), wqkv_ref[...],
                  preferred_element_type=jnp.float32)         # (T, 3D)
    qk = qkv[:, :two_d]

    # ---- rotary: in-kernel pair swizzle (XLU rolls); signs + 1/sqrt(hd) baked into tables ----
    rope = rope_ref[...]
    cos2  = rope[:, 0 * two_d:1 * two_d]
    sin_e = rope[:, 1 * two_d:2 * two_d]                      # nonzero on even lanes, carries -sin
    sin_o = rope[:, 2 * two_d:3 * two_d]                      # nonzero on odd  lanes, carries +sin
    qk_rot = (qk * cos2
              + pltpu.roll(qk, two_d - 1, 1) * sin_e          # neighbor j+1 (wrap never selected)
              + pltpu.roll(qk, 1, 1) * sin_o)                 # neighbor j-1 (wrap never selected)

    # ---- batched attention: heads -> leading batch dim; one einsum pair for all heads ----
    def split_heads(t, off):                                  # -> (H, T, HEAD_DIM)
        return jnp.stack([t[:, off + h * HEAD_DIM: off + (h + 1) * HEAD_DIM]
                          for h in range(N_HEADS)], axis=0).astype(jnp.bfloat16)

    qh = split_heads(qk_rot, 0)
    kh = split_heads(qk_rot, DIM)
    vh = split_heads(qkv, two_d)

    s = jnp.einsum("hqd,hkd->hqk", qh, kh,
                   preferred_element_type=jnp.float32)        # (H, T, T)
    s = s + mask_ref[...][None, :, :]                         # block-diag causal mask, added once
    m = jnp.max(s, axis=-1, keepdims=True)
    p = jnp.exp(s - m)
    # Every row has its diagonal unmasked -> denominator > 0, approx reciprocal is safe here.
    p = p * pl.reciprocal(jnp.sum(p, axis=-1, keepdims=True), approx=True)
    oh = jnp.einsum("hqk,hkd->hqd", p.astype(jnp.bfloat16), vh,
                    preferred_element_type=jnp.float32)       # (H, T, HEAD_DIM)

    # Wo as head-blocked batched matmul + leading-axis sum: no lane-dim concatenate.
    attn_out = jnp.sum(
        jnp.einsum("hqd,hdn->hqn", oh.astype(jnp.bfloat16), wo_ref[...],
                   preferred_element_type=jnp.float32), axis=0)          # (T, D)
    h_res = x + attn_out                                      # first residual (f32)

    # ---- FFN RMSNorm + SwiGLU with fused w1/w3 slab ----
    hn = (h_res * jax.lax.rsqrt(jnp.mean(h_res * h_res, axis=-1, keepdims=True) + NORM_EPS)
          * norms_ref[1:2, :])
    ag = jnp.dot(hn.astype(jnp.bfloat16), w13_ref[...],
                 preferred_element_type=jnp.float32)          # (T, 2*FFN_HIDDEN)
    a = ag[:, :FFN_HIDDEN]
    g = ag[:, FFN_HIDDEN:]
    f = (a * jax.nn.sigmoid(a)) * g                           # SiLU(w1 x) * w3 x (f32)
    ffn = jnp.dot(f.astype(jnp.bfloat16), w2_ref[...],
                  preferred_element_type=jnp.float32)
    out_ref[...] = (h_res + ffn).astype(out_ref.dtype)        # second residual


@jax.jit
def transformer_block(x, prep):
    B, S, D = x.shape
    T = B * S
    x2d = x.reshape(T, D)
    vmem = pl.BlockSpec(memory_space=pltpu.MemorySpace.VMEM)

    flops = (2 * T * D * (3 * D + D + 2 * FFN_HIDDEN)
             + 2 * T * FFN_HIDDEN * D
             + 4 * N_HEADS * T * T * HEAD_DIM)
    cost = pl.CostEstimate(
        flops=flops,
        transcendentals=N_HEADS * T * T + T * FFN_HIDDEN + N_HEADS * T + 2 * T,
        bytes_accessed=(x2d.size + prep["rope"].size + prep["mask"].size
                        + prep["norms"].size + T * D) * 4
                       + 2 * (prep["wqkv"].size + prep["wo_h"].size
                              + prep["w13"].size + prep["w2"].size))

    out2d = pl.pallas_call(
        transformer_block_kernel,
        out_shape=jax.ShapeDtypeStruct((T, D), x.dtype),
        in_specs=[vmem] * 8,
        out_specs=vmem,
        cost_estimate=cost,
    )(x2d, prep["rope"], prep["mask"], prep["norms"],
      prep["wqkv"], prep["wo_h"], prep["w13"], prep["w2"])
    return out2d.reshape(B, S, D)


def prepare_block(params, batch, seq_len):
    """One-time host-side prep: fused weight slabs, packed rotary tables, packed norms,
    block-diagonal causal mask.  Cache the result; the per-call path does no slab work."""
    D, H, HD = DIM, N_HEADS, HEAD_DIM
    scale = 1.0 / math.sqrt(HD)

    inv_freq = 1.0 / (10000.0 ** (jnp.arange(0, HD, 2, dtype=jnp.float32) / HD))
    ang = jnp.outer(jnp.arange(seq_len, dtype=jnp.float32), inv_freq)    # (S, HD//2)
    cos, sin = jnp.cos(ang), jnp.sin(ang)
    zeros = jnp.zeros_like(sin)
    cos_i  = jnp.repeat(cos, 2, axis=-1)                                 # [c0,c0,c1,c1,...]
    sinE_i = jnp.stack([-sin, zeros], axis=-1).reshape(seq_len, HD)      # [-s0,0,-s1,0,...]
    sinO_i = jnp.stack([zeros, sin], axis=-1).reshape(seq_len, HD)       # [0,s0,0,s1,...]
    cos_d  = jnp.tile(cos_i, (1, H))                                     # (S, D)
    sinE_d = jnp.tile(sinE_i, (1, H))
    sinO_d = jnp.tile(sinO_i, (1, H))
    # q half carries the 1/sqrt(head_dim) score scale; k half is unscaled
    cos2  = jnp.concatenate([cos_d * scale, cos_d], axis=-1)             # (S, 2D)
    sinE2 = jnp.concatenate([sinE_d * scale, sinE_d], axis=-1)
    sinO2 = jnp.concatenate([sinO_d * scale, sinO_d], axis=-1)
    rope = jnp.tile(jnp.concatenate([cos2, sinE2, sinO2], axis=-1), (batch, 1))  # (B*S, 6D)

    # block-diagonal causal mask over the flattened (B*S) token axis (heads become the only
    # einsum batch dim inside the kernel; cross-batch pairs are killed here instead).
    pos = jnp.tile(jnp.arange(seq_len), batch)
    bat = jnp.repeat(jnp.arange(batch), seq_len)
    ok = (bat[:, None] == bat[None, :]) & (pos[None, :] <= pos[:, None])
    mask = jnp.where(ok, 0.0, -1e30).astype(jnp.float32)                 # (B*S, B*S)

    return dict(
        rope=rope,
        mask=mask,
        norms=jnp.stack([params["attn_norm"], params["ffn_norm"]], axis=0),       # (2, D)
        wqkv=jnp.concatenate([params["wqT"], params["wkT"], params["wvT"]],
                             axis=1).astype(jnp.bfloat16),                         # (D, 3D)
        wo_h=params["woT"].reshape(H, HD, D).astype(jnp.bfloat16),                 # (H, HD, D)
        w13=jnp.concatenate([params["w1T"], params["w3T"]],
                            axis=1).astype(jnp.bfloat16),                          # (D, 2*hid)
        w2=params["w2T"].astype(jnp.bfloat16),                                     # (hid, D)
    )


def init_params(key, dim, hidden):
    ks = jax.random.split(key, 9)
    scale = 0.05

    def w(k, shape):
        return jax.random.normal(k, shape, jnp.float32) * scale

    return dict(
        wqT=w(ks[0], (dim, dim)), wkT=w(ks[1], (dim, dim)), wvT=w(ks[2], (dim, dim)),
        woT=w(ks[3], (dim, dim)),
        w1T=w(ks[4], (dim, hidden)), w2T=w(ks[5], (hidden, dim)), w3T=w(ks[6], (dim, hidden)),
        attn_norm=1.0 + 0.1 * jax.random.normal(ks[7], (dim,), jnp.float32),
        ffn_norm=1.0 + 0.1 * jax.random.normal(ks[8], (dim,), jnp.float32),
    )


def rotary_freqs_cis(seq_len, head_dim, theta=10000.0):
    inv_freq = 1.0 / (theta ** (jnp.arange(0, head_dim, 2, dtype=jnp.float32) / head_dim))
    ang = jnp.outer(jnp.arange(seq_len, dtype=jnp.float32), inv_freq)
    return jax.lax.complex(jnp.cos(ang), jnp.sin(ang))       # == torch.polar(1, ang)


def ref_transformer_block(x, p, freqs_cis, mask):
    """Pure-JAX reference following the PyTorch code exactly (complex rotary)."""
    def rmsnorm(v, w):
        return v * jax.lax.rsqrt(jnp.mean(v * v, -1, keepdims=True) + NORM_EPS) * w

    B, S, D = x.shape
    xn = rmsnorm(x, p["attn_norm"])
    q = (xn @ p["wqT"]).reshape(B, S, N_HEADS, HEAD_DIM)
    k = (xn @ p["wkT"]).reshape(B, S, N_HEADS, HEAD_DIM)
    v = (xn @ p["wvT"]).reshape(B, S, N_HEADS, HEAD_DIM)
    qc = q.reshape(B, S, N_HEADS, HEAD_DIM // 2, 2)
    kc = k.reshape(B, S, N_HEADS, HEAD_DIM // 2, 2)
    qc = jax.lax.complex(qc[..., 0], qc[..., 1])
    kc = jax.lax.complex(kc[..., 0], kc[..., 1])
    f = freqs_cis[None, :, None, :]
    qr, kr = qc * f, kc * f
    q = jnp.stack([qr.real, qr.imag], -1).reshape(B, S, N_HEADS, HEAD_DIM)
    k = jnp.stack([kr.real, kr.imag], -1).reshape(B, S, N_HEADS, HEAD_DIM)
    scores = jnp.einsum("bqhd,bkhd->bhqk", q, k) / math.sqrt(HEAD_DIM) + mask[None, None]
    probs = jax.nn.softmax(scores, axis=-1)
    o = jnp.einsum("bhqk,bkhd->bqhd", probs, v).reshape(B, S, D)
    h = x + o @ p["woT"]
    hn = rmsnorm(h, p["ffn_norm"])
    ff = (jax.nn.silu(hn @ p["w1T"]) * (hn @ p["w3T"])) @ p["w2T"]
    return h + ff


if __name__ == "__main__":
    key = jax.random.PRNGKey(0)
    B, S = 2, 8
    kx, kp = jax.random.split(key)
    x = jax.random.normal(kx, (B, S, DIM), jnp.float32)
    params = init_params(kp, DIM, FFN_HIDDEN)

    prep = prepare_block(params, B, S)                        # one-time: slabs, tables, mask

    out = transformer_block(x, prep)
    out = jax.block_until_ready(out)

    # pure-JAX reference (complex rotary, per-batch causal mask; start_pos = 0)
    freqs_cis = rotary_freqs_cis(S, HEAD_DIM)
    idx = jnp.arange(S)
    ref_mask = jnp.where(idx[None, :] > idx[:, None], jnp.float32(-1e30), jnp.float32(0.0))
    ref = ref_transformer_block(x, params, freqs_cis, ref_mask)
    if not bool(jnp.allclose(out, ref, rtol=5e-2, atol=5e-2)):
        raise AssertionError("Pallas kernel output mismatches pure-JAX reference")
    print("KERNEL_OK")
</pallas_src>

<mosaic_0001>
module attributes {stable_mosaic.version = 11 : i64} {
  func.func @transformer_block_kernel(%arg0: memref<16x32xf32, #tpu.memory_space<vmem>>, %arg1: memref<16x192xf32, #tpu.memory_space<vmem>>, %arg2: memref<16x16xf32, #tpu.memory_space<vmem>>, %arg3: memref<2x32xf32, #tpu.memory_space<vmem>>, %arg4: memref<32x96xbf16, #tpu.memory_space<vmem>>, %arg5: memref<4x8x32xbf16, #tpu.memory_space<vmem>>, %arg6: memref<32x192xbf16, #tpu.memory_space<vmem>>, %arg7: memref<96x32xbf16, #tpu.memory_space<vmem>>, %arg8: memref<16x32xf32, #tpu.memory_space<vmem>>) attributes {dimension_semantics = [], scalar_prefetch = 0 : i64, scratch_operands = 0 : i64, tpu.core_type = #tpu.core_type<tc>} {
    %c0 = arith.constant 0 : index
    %c0_0 = arith.constant 0 : index
    %0 = vector.load %arg0[%c0, %c0_0] : memref<16x32xf32, #tpu.memory_space<vmem>>, vector<16x32xf32>
    %1 = arith.mulf %0, %0 : vector<16x32xf32>
    %cst = arith.constant dense<0.000000e+00> : vector<16xf32>
    %2 = vector.multi_reduction <add>, %1, %cst [1] : vector<16x32xf32> to vector<16xf32>
    %3 = vector.shape_cast %2 : vector<16xf32> to vector<16x1xf32>
    %cst_1 = arith.constant 3.200000e+01 : f32
    %4 = vector.broadcast %cst_1 : f32 to vector<16x1xf32>
    %5 = arith.divf %3, %4 : vector<16x1xf32>
    %cst_2 = arith.constant 9.99999974E-6 : f32
    %6 = vector.broadcast %cst_2 : f32 to vector<16x1xf32>
    %7 = arith.addf %5, %6 : vector<16x1xf32>
    %8 = math.rsqrt %7 : vector<16x1xf32>
    %9 = vector.broadcast %8 : vector<16x1xf32> to vector<16x32xf32>
    %10 = arith.mulf %0, %9 : vector<16x32xf32>
    %c0_3 = arith.constant 0 : index
    %c0_4 = arith.constant 0 : index
    %11 = vector.load %arg3[%c0_3, %c0_4] : memref<2x32xf32, #tpu.memory_space<vmem>>, vector<1x32xf32>
    %12 = vector.broadcast %11 : vector<1x32xf32> to vector<16x32xf32>
    %13 = arith.mulf %10, %12 : vector<16x32xf32>
    %14 = arith.truncf %13 : vector<16x32xf32> to vector<16x32xbf16>
    %c0_5 = arith.constant 0 : index
    %c0_6 = arith.constant 0 : index
    %15 = vector.load %arg4[%c0_5, %c0_6] : memref<32x96xbf16, #tpu.memory_space<vmem>>, vector<32x96xbf16>
    %cst_7 = arith.constant dense<0.000000e+00> : vector<16x96xf32>
    %16 = tpu.matmul %14, %15, %cst_7 {dimension_numbers = #tpu.dot_dimension_numbers<[1], [0], [0], [1], [0, 0, 1, 1], [], []>} : vector<16x32xbf16>, vector<32x96xbf16>, vector<16x96xf32> -> vector<16x96xf32>
    %17 = vector.extract_strided_slice %16 {offsets = [0, 0], sizes = [16, 64], strides = [1, 1]} : vector<16x96xf32> to vector<16x64xf32>
    %c0_8 = arith.constant 0 : index
    %c0_9 = arith.constant 0 : index
    %18 = vector.load %arg1[%c0_8, %c0_9] : memref<16x192xf32, #tpu.memory_space<vmem>>, vector<16x192xf32>
    %19 = vector.extract_strided_slice %18 {offsets = [0, 0], sizes = [16, 64], strides = [1, 1]} : vector<16x192xf32> to vector<16x64xf32>
    %20 = vector.extract_strided_slice %18 {offsets = [0, 64], sizes = [16, 64], strides = [1, 1]} : vector<16x192xf32> to vector<16x64xf32>
    %21 = vector.extract_strided_slice %18 {offsets = [0, 128], sizes = [16, 64], strides = [1, 1]} : vector<16x192xf32> to vector<16x64xf32>
    %22 = arith.mulf %17, %19 : vector<16x64xf32>
    %c63_i32 = arith.constant 63 : i32
    %23 = tpu.dynamic_rotate %17 by %c63_i32 dim 1 : vector<16x64xf32>, i32 -> vector<16x64xf32>
    %24 = arith.mulf %23, %20 : vector<16x64xf32>
    %25 = arith.addf %22, %24 : vector<16x64xf32>
    %c1_i32 = arith.constant 1 : i32
    %26 = tpu.dynamic_rotate %17 by %c1_i32 dim 1 : vector<16x64xf32>, i32 -> vector<16x64xf32>
    %27 = arith.mulf %26, %21 : vector<16x64xf32>
    %28 = arith.addf %25, %27 : vector<16x64xf32>
    %29 = vector.extract_strided_slice %28 {offsets = [0, 0], sizes = [16, 8], strides = [1, 1]} : vector<16x64xf32> to vector<16x8xf32>
    %30 = vector.extract_strided_slice %28 {offsets = [0, 8], sizes = [16, 8], strides = [1, 1]} : vector<16x64xf32> to vector<16x8xf32>
    %31 = vector.extract_strided_slice %28 {offsets = [0, 16], sizes = [16, 8], strides = [1, 1]} : vector<16x64xf32> to vector<16x8xf32>
    %32 = vector.extract_strided_slice %28 {offsets = [0, 24], sizes = [16, 8], strides = [1, 1]} : vector<16x64xf32> to vector<16x8xf32>
    %33 = vector.shape_cast %29 : vector<16x8xf32> to vector<1x16x8xf32>
    %34 = vector.shape_cast %30 : vector<16x8xf32> to vector<1x16x8xf32>
    %35 = vector.shape_cast %31 : vector<16x8xf32> to vector<1x16x8xf32>
    %36 = vector.shape_cast %32 : vector<16x8xf32> to vector<1x16x8xf32>
    %37 = tpu.concatenate %33, %34, %35, %36 in 0 : vector<1x16x8xf32>, vector<1x16x8xf32>, vector<1x16x8xf32>, vector<1x16x8xf32> -> vector<4x16x8xf32>
    %38 = arith.truncf %37 : vector<4x16x8xf32> to vector<4x16x8xbf16>
    %39 = vector.extract_strided_slice %28 {offsets = [0, 32], sizes = [16, 8], strides = [1, 1]} : vector<16x64xf32> to vector<16x8xf32>
    %40 = vector.extract_strided_slice %28 {offsets = [0, 40], sizes = [16, 8], strides = [1, 1]} : vector<16x64xf32> to vector<16x8xf32>
    %41 = vector.extract_strided_slice %28 {offsets = [0, 48], sizes = [16, 8], strides = [1, 1]} : vector<16x64xf32> to vector<16x8xf32>
    %42 = vector.extract_strided_slice %28 {offsets = [0, 56], sizes = [16, 8], strides = [1, 1]} : vector<16x64xf32> to vector<16x8xf32>
    %43 = vector.shape_cast %39 : vector<16x8xf32> to vector<1x16x8xf32>
    %44 = vector.shape_cast %40 : vector<16x8xf32> to vector<1x16x8xf32>
    %45 = vector.shape_cast %41 : vector<16x8xf32> to vector<1x16x8xf32>
    %46 = vector.shape_cast %42 : vector<16x8xf32> to vector<1x16x8xf32>
    %47 = tpu.concatenate %43, %44, %45, %46 in 0 : vector<1x16x8xf32>, vector<1x16x8xf32>, vector<1x16x8xf32>, vector<1x16x8xf32> -> vector<4x16x8xf32>
    %48 = arith.truncf %47 : vector<4x16x8xf32> to vector<4x16x8xbf16>
    %49 = vector.extract_strided_slice %16 {offsets = [0, 64], sizes = [16, 8], strides = [1, 1]} : vector<16x96xf32> to vector<16x8xf32>
    %50 = vector.extract_strided_slice %16 {offsets = [0, 72], sizes = [16, 8], strides = [1, 1]} : vector<16x96xf32> to vector<16x8xf32>
    %51 = vector.extract_strided_slice %16 {offsets = [0, 80], sizes = [16, 8], strides = [1, 1]} : vector<16x96xf32> to vector<16x8xf32>
    %52 = vector.extract_strided_slice %16 {offsets = [0, 88], sizes = [16, 8], strides = [1, 1]} : vector<16x96xf32> to vector<16x8xf32>
    %53 = vector.shape_cast %49 : vector<16x8xf32> to vector<1x16x8xf32>
    %54 = vector.shape_cast %50 : vector<16x8xf32> to vector<1x16x8xf32>
    %55 = vector.shape_cast %51 : vector<16x8xf32> to vector<1x16x8xf32>
    %56 = vector.shape_cast %52 : vector<16x8xf32> to vector<1x16x8xf32>
    %57 = tpu.concatenate %53, %54, %55, %56 in 0 : vector<1x16x8xf32>, vector<1x16x8xf32>, vector<1x16x8xf32>, vector<1x16x8xf32> -> vector<4x16x8xf32>
    %58 = arith.truncf %57 : vector<4x16x8xf32> to vector<4x16x8xbf16>
    "tpu.trace_start"() <{level = 10 : i32, message = "hqd,hkd->hqk"}> : () -> ()
    %cst_10 = arith.constant dense<0.000000e+00> : vector<4x16x16xf32>
    %59 = tpu.matmul %38, %48, %cst_10 {dimension_numbers = #tpu.dot_dimension_numbers<[2], [2], [1], [1], [0, 0, 0, 1, 1, 1], [0], [0]>} : vector<4x16x8xbf16>, vector<4x16x8xbf16>, vector<4x16x16xf32> -> vector<4x16x16xf32>
    "tpu.trace_stop"() : () -> ()
    %c0_11 = arith.constant 0 : index
    %c0_12 = arith.constant 0 : index
    %60 = vector.load %arg2[%c0_11, %c0_12] : memref<16x16xf32, #tpu.memory_space<vmem>>, vector<16x16xf32>
    %61 = vector.shape_cast %60 : vector<16x16xf32> to vector<1x16x16xf32>
    %62 = vector.broadcast %61 : vector<1x16x16xf32> to vector<4x16x16xf32>
    %63 = arith.addf %59, %62 : vector<4x16x16xf32>
    %cst_13 = arith.constant dense<0xFF800000> : vector<4x16xf32>
    %64 = vector.multi_reduction <maximumf>, %63, %cst_13 [2] : vector<4x16x16xf32> to vector<4x16xf32>
    %65 = vector.shape_cast %64 : vector<4x16xf32> to vector<4x16x1xf32>
    %66 = vector.broadcast %65 : vector<4x16x1xf32> to vector<4x16x16xf32>
    %67 = arith.subf %63, %66 : vector<4x16x16xf32>
    %68 = math.exp %67 : vector<4x16x16xf32>
    %cst_14 = arith.constant dense<0.000000e+00> : vector<4x16xf32>
    %69 = vector.multi_reduction <add>, %68, %cst_14 [2] : vector<4x16x16xf32> to vector<4x16xf32>
    %70 = vector.shape_cast %69 : vector<4x16xf32> to vector<4x16x1xf32>
    %71 = tpu.reciprocal %70 {approx = true} : vector<4x16x1xf32> -> vector<4x16x1xf32>
    %72 = vector.broadcast %71 : vector<4x16x1xf32> to vector<4x16x16xf32>
    %73 = arith.mulf %68, %72 : vector<4x16x16xf32>
    %74 = arith.truncf %73 : vector<4x16x16xf32> to vector<4x16x16xbf16>
    "tpu.trace_start"() <{level = 10 : i32, message = "hqk,hkd->hqd"}> : () -> ()
    %cst_15 = arith.constant dense<0.000000e+00> : vector<4x16x8xf32>
    %75 = tpu.matmul %74, %58, %cst_15 {dimension_numbers = #tpu.dot_dimension_numbers<[2], [1], [1], [2], [0, 0, 0, 1, 1, 2], [0], [0]>} : vector<4x16x16xbf16>, vector<4x16x8xbf16>, vector<4x16x8xf32> -> vector<4x16x8xf32>
    "tpu.trace_stop"() : () -> ()
    %76 = arith.truncf %75 : vector<4x16x8xf32> to vector<4x16x8xbf16>
    %c0_16 = arith.constant 0 : index
    %c0_17 = arith.constant 0 : index
    %c0_18 = arith.constant 0 : index
    %77 = vector.load %arg5[%c0_16, %c0_17, %c0_18] : memref<4x8x32xbf16, #tpu.memory_space<vmem>>, vector<4x8x32xbf16>
    "tpu.trace_start"() <{level = 10 : i32, message = "hqd,hdn->hqn"}> : () -> ()
    %cst_19 = arith.constant dense<0.000000e+00> : vector<4x16x32xf32>
    %78 = tpu.matmul %76, %77, %cst_19 {dimension_numbers = #tpu.dot_dimension_numbers<[2], [1], [1], [2], [0, 0, 0, 1, 1, 2], [0], [0]>} : vector<4x16x8xbf16>, vector<4x8x32xbf16>, vector<4x16x32xf32> -> vector<4x16x32xf32>
    "tpu.trace_stop"() : () -> ()
    %cst_20 = arith.constant dense<0.000000e+00> : vector<16x32xf32>
    %79 = vector.multi_reduction <add>, %78, %cst_20 [0] : vector<4x16x32xf32> to vector<16x32xf32>
    %80 = arith.addf %0, %79 : vector<16x32xf32>
    %81 = arith.mulf %80, %80 : vector<16x32xf32>
    %cst_21 = arith.constant dense<0.000000e+00> : vector<16xf32>
    %82 = vector.multi_reduction <add>, %81, %cst_21 [1] : vector<16x32xf32> to vector<16xf32>
    %83 = vector.shape_cast %82 : vector<16xf32> to vector<16x1xf32>
    %cst_22 = arith.constant 3.200000e+01 : f32
    %84 = vector.broadcast %cst_22 : f32 to vector<16x1xf32>
    %85 = arith.divf %83, %84 : vector<16x1xf32>
    %cst_23 = arith.constant 9.99999974E-6 : f32
    %86 = vector.broadcast %cst_23 : f32 to vector<16x1xf32>
    %87 = arith.addf %85, %86 : vector<16x1xf32>
    %88 = math.rsqrt %87 : vector<16x1xf32>
    %89 = vector.broadcast %88 : vector<16x1xf32> to vector<16x32xf32>
    %90 = arith.mulf %80, %89 : vector<16x32xf32>
    %c1 = arith.constant 1 : index
    %c0_24 = arith.constant 0 : index
    %91 = vector.load %arg3[%c1, %c0_24] : memref<2x32xf32, #tpu.memory_space<vmem>>, vector<1x32xf32>
    %92 = vector.broadcast %91 : vector<1x32xf32> to vector<16x32xf32>
    %93 = arith.mulf %90, %92 : vector<16x32xf32>
    %94 = arith.truncf %93 : vector<16x32xf32> to vector<16x32xbf16>
    %c0_25 = arith.constant 0 : index
    %c0_26 = arith.constant 0 : index
    %95 = vector.load %arg6[%c0_25, %c0_26] : memref<32x192xbf16, #tpu.memory_space<vmem>>, vector<32x192xbf16>
    %cst_27 = arith.constant dense<0.000000e+00> : vector<16x192xf32>
    %96 = tpu.matmul %94, %95, %cst_27 {dimension_numbers = #tpu.dot_dimension_numbers<[1], [0], [0], [1], [0, 0, 1, 1], [], []>} : vector<16x32xbf16>, vector<32x192xbf16>, vector<16x192xf32> -> vector<16x192xf32>
    %97 = vector.extract_strided_slice %96 {offsets = [0, 0], sizes = [16, 96], strides = [1, 1]} : vector<16x192xf32> to vector<16x96xf32>
    %98 = vector.extract_strided_slice %96 {offsets = [0, 96], sizes = [16, 96], strides = [1, 1]} : vector<16x192xf32> to vector<16x96xf32>
    %99 = arith.negf %97 : vector<16x96xf32>
    %100 = math.exp %99 : vector<16x96xf32>
    %cst_28 = arith.constant 1.000000e+00 : f32
    %101 = vector.broadcast %cst_28 : f32 to vector<16x96xf32>
    %102 = arith.addf %101, %100 : vector<16x96xf32>
    %103 = arith.divf %101, %102 : vector<16x96xf32>
    %104 = arith.mulf %97, %103 : vector<16x96xf32>
    %105 = arith.mulf %104, %98 : vector<16x96xf32>
    %106 = arith.truncf %105 : vector<16x96xf32> to vector<16x96xbf16>
    %c0_29 = arith.constant 0 : index
    %c0_30 = arith.constant 0 : index
    %107 = vector.load %arg7[%c0_29, %c0_30] : memref<96x32xbf16, #tpu.memory_space<vmem>>, vector<96x32xbf16>
    %cst_31 = arith.constant dense<0.000000e+00> : vector<16x32xf32>
    %108 = tpu.matmul %106, %107, %cst_31 {dimension_numbers = #tpu.dot_dimension_numbers<[1], [0], [0], [1], [0, 0, 1, 1], [], []>} : vector<16x96xbf16>, vector<96x32xbf16>, vector<16x32xf32> -> vector<16x32xf32>
    %109 = arith.addf %80, %108 : vector<16x32xf32>
    %c0_32 = arith.constant 0 : index
    %c0_33 = arith.constant 0 : index
    %110 = vector.load %arg8[%c0_32, %c0_33] : memref<16x32xf32, #tpu.memory_space<vmem>>, vector<16x32xf32>
    tpu.vector_store %arg8[%c0_32, %c0_33], %109 {strides = array<i32>} : memref<16x32xf32, #tpu.memory_space<vmem>>, vector<16x32xf32>,
    return
  }
}

</mosaic_0001>

<bundles_post_ra>
// kernel: transformer_block.1
= control target key start
LH: loop header
LB: loop body
LE: loop exit
PB: predicated region body
PF: predicated region fallthrough
CT: control target
= control target key end

     0   :  { %13 = vsyncpa [#allocation3], 0  ;;  %s1964_s0 = inlined_call_operand.hbm [shape: f32[16,32], index: 0, kind: input, shape index: {}]   ;;  %s1965_s1 = inlined_call_operand.vmem [shape: f32[16,192], index: 1, kind: input, shape index: {}]   ;;  %s1966_s2 = inlined_call_operand.hbm [shape: f32[16,16], index: 2, kind: input, shape index: {}]   ;;  %s1967_s3 = inlined_call_operand.vmem [shape: f32[2,32], index: 3, kind: input, shape index: {}]   ;;  %s1968_s4 = inlined_call_operand.vmem [shape: bf16[32,96], index: 4, kind: input, shape index: {}]   ;;  %s1969_s5 = inlined_call_operand.hbm [shape: bf16[4,8,32], index: 5, kind: input, shape index: {}]   ;;  %s1970_s6 = inlined_call_operand.vmem [shape: bf16[32,192], index: 6, kind: input, shape index: {}]   ;;  %s1971_s7 = inlined_call_operand.vmem [shape: bf16[96,32], index: 7, kind: input, shape index: {}]   ;;  %s1972_s8 = inlined_call_operand.hbm [shape: f32[16,32], index: 8, kind: output, shape index: {}]  }
   0x1   :  { %14 = vsyncpa [#allocation6], 0 }
   0x2   :  { %15 = vsyncpa [#allocation4], 0  ;;  %s1576_s27 = smov [#allocation5]   ;;  %s1577_s29 = smov [#allocation2]  }
   0x3   :  { %s35_s28 = sshll.u32 %s1576_s27, 4  ;;  %s21_s30 = sshll.u32 %s1577_s29, 4  ;;  %s36_s28 = int_to_ptr.vmem [resolvable:$true] %s35_s28  ;;  %s1640_s30 = int_to_ptr.vmem [resolvable:$true] %s21_s30 }
   0x4   :  { %s1482_s11 = scalar_lea.hbm %s1966_s2, 256 }
   0x5   :  { %p1483_p0 = scmp.ne.s32.totalorder %s1966_s2, %s1482_s11  ;;  %p1486_p1 = scmp.lt.u32.totalorder %s1482_s11, %s1966_s2 }
   0x7   :  { %p1488_p2 = pnand %p1486_p1, %p1483_p0 }
   0x9   :  { %1491 = shalt.err (!%p1488_p2)
}
   0xa   :  { %s1492_s16 = scalar_lea.vmem %s36_s28, 256  ;;  %p1497_p4 = scmp.lt.s32.totalorder %s36_s28, %s36_s28 }
   0xb   :  { %p1493_p3 = scmp.ne.s32.totalorder %s36_s28, %s1492_s16  ;;  %p1498_p5 = scmp.lt.s32.totalorder %s1492_s16, %s1492_s16 }
   0xd   :  { %p1499_p6 = por %p1498_p5, %p1497_p4 }
   0xf   :  { %p1500_p7 = pnand %p1499_p6, %p1493_p3 }
  0x11   :  { %1503 = shalt.err (!%p1500_p7)
}
  0x12   :  { %s1578_s17 = smov 128   ;;  %s1579_s18 = smov 8  }
  0x13   :  { %41 = dma.hbm_to_vmem [thread:$0]  %s1966_s2, 256, %s36_s28, [#allocation6], %s1578_s17, %s1578_s17, %s1579_s18  }
  0x14   :  { %s1504_s23 = scalar_lea.hbm %s1964_s0, 256 }
  0x15   :  { %p1505_p8 = scmp.ne.s32.totalorder %s1964_s0, %s1504_s23  ;;  %p1508_p9 = scmp.lt.u32.totalorder %s1504_s23, %s1964_s0 }
  0x17   :  { %p1510_p10 = pnand %p1508_p9, %p1505_p8 }
  0x19   :  { %1513 = shalt.err (!%p1510_p10)
}
  0x1a   :  { %s1514_s29 = scalar_lea.vmem %s1640_s30, 256  ;;  %p1519_p12 = scmp.lt.s32.totalorder %s1640_s30, %s1640_s30 }
  0x1b   :  { %p1515_p11 = scmp.ne.s32.totalorder %s1640_s30, %s1514_s29  ;;  %p1520_p13 = scmp.lt.s32.totalorder %s1514_s29, %s1514_s29 }
  0x1d   :  { %p1521_p0 = por %p1520_p13, %p1519_p12 }
  0x1f   :  { %p1522_p1 = pnand %p1521_p0, %p1515_p11 }
  0x21   :  { %1525 = shalt.err (!%p1522_p1)
}
  0x22   :  { %27 = dma.hbm_to_vmem [thread:$0]  %s1964_s0, 256, %s1640_s30, [#allocation3], %s1578_s17, %s1578_s17, %s1579_s18  }
  0x23   :  { %s1580_s9 = smov [#allocation7]   ;;  %s1526_s13 = scalar_lea.hbm %s1969_s5, 256 }
  0x24   :  { %s51_s10 = sshll.u32 %s1580_s9, 4  ;;  %p1527_p2 = scmp.ne.s32.totalorder %s1969_s5, %s1526_s13  ;;  %s52_s10 = int_to_ptr.vmem [resolvable:$true] %s51_s10 }
  0x25   :  { %p1530_p3 = scmp.lt.u32.totalorder %s1526_s13, %s1969_s5 }
  0x27   :  { %p1532_p4 = pnand %p1530_p3, %p1527_p2 }
  0x29   :  { %1535 = shalt.err (!%p1532_p4)
}
  0x2a   :  { %s1536_s20 = scalar_lea.vmem %s52_s10, 256  ;;  %p1541_p6 = scmp.lt.s32.totalorder %s52_s10, %s52_s10 }
  0x2b   :  { %p1537_p5 = scmp.ne.s32.totalorder %s52_s10, %s1536_s20  ;;  %p1542_p7 = scmp.lt.s32.totalorder %s1536_s20, %s1536_s20 }
  0x2d   :  { %p1543_p8 = por %p1542_p7, %p1541_p6 }
  0x2f   :  { %p1544_p9 = pnand %p1543_p8, %p1537_p5 }
  0x31   :  { %1547 = shalt.err (!%p1544_p9)
}
  0x32   :  { %s1581_s0 = smov 64   ;;  %s1582_s30 = smov 4  }
  0x33   :  { %57 = dma.hbm_to_vmem [thread:$0]  %s1969_s5, 256, %s52_s10, [#allocation6], %s1581_s0, %s1581_s0, %s1582_s30  }
  0x34   :  { %1570 = dma.done.wait [#allocation3], 256  }
  0x35   :  { %1571 = vsyncadd [#allocation3], 4294967040 }
  0x36   :  { %1572 = dma.done.wait [#allocation6], 512  }
  0x37   :  { %1573 = vsyncadd [#allocation6], 4294966784  ;;  %v1691_v0 = vld [vmem:[#allocation2] sm:$0xff]  ;;  %vm76_vm0 = vcmask 261120   ;;  %v1693_v1 = vld [vmem:[#allocation2 + $0x8] sm:$0xff]  ;;  %v1583_v7 = vmov 0.0  }
  0x38   :  { %v74_v2 = vmul.f32 %v1691_v0, %v1691_v0  ;;  %v75_v3 = vmul.f32 %v1693_v1, %v1693_v1  ;;  %v1420_v6 = vld [vmem:[%s1968_s4] sm:$0xff]   ;;  %1275 = vmatprep.subr.bf16.mxu1 %v1583_v7  ;;  %vm1584_vm1 = vmmov 0   ;;  %v1421_v8 = vld [vmem:[%s1968_s4 + $0x8] sm:$0xff]   ;;  %1289 = vmatprep.subr.bf16.mxu0 %v1583_v7  ;;  %v162_v25 = vld [vmem:[%s1965_s1 + $0x10] sm:$0xff]  ;;  %s1585_s9 = smov 65   ;;  %s1586_s12 = smov 63  }
  0x39   :  { %1279 = vmatprep.mubr.msk.bf16.mxu1 %vm1584_vm1, %v1583_v7  ;;  %1276 = vmatpush3.bf16.msra.mxu1 %v1420_v6  ;;  %v1210_v18 = vld [vmem:[%s1967_s3] ss:$0 sm:$0xff]  ;;  %v161_v33 = vld [vmem:[%s1965_s1 + $0x8] sm:$0xff]  ;;  %vm166_vm2 = vcmask 1048064   ;;  %v163_v38 = vld [vmem:[%s1965_s1 + $0x18] sm:$0xff]  ;;  %s1587_s15 = smov 127  }
  0x3a   :  { %v77_v4 = vsel %vm76_vm0, %v74_v2, 0.0  ;;  %v80_v5 = vsel %vm76_vm0, %v75_v3, 0.0  ;;  %1277 = vmatprep.subr.bf16.mxu1 %v1583_v7  ;;  %1291 = vmatprep.mubr.msk.bf16.mxu0 %vm1584_vm1, %v1583_v7  ;;  %v160_v23 = vld [vmem:[%s1965_s1] sm:$0xff]  ;;  %s1588_s1 = smov 112   ;;  %s1589_s16 = smov 120   ;;  %vm272_vm3 = vcmask 64512  }
  0x3b   :  { %78 = vadd.xlane.f32.xlu0 %v77_v4  ;;  %s1590_s19 = smov 104   ;;  %s1591_s20 = smov 96   ;;  %vm470_vm4 = vcmask 130048   ;;  %vm766_vm5 = vcmask 1043456   ;;  %vm1143_vm6 = vcmask 785408  }
  0x3d   :  { %1278 = vmatpush3.bf16.msra.mxu1 %v1421_v8 }
  0x3e   :  { %1283 = vmatprep.subr.bf16.mxu1 %v1583_v7 }
  0x3f   :  { %81 = vadd.xlane.f32.xlu0 %v80_v5 }
  0xc8   :  { %v79_v9 = vpop.xlane.xlu0 %78 }
  0xc9   :  { %v84_v10 = vmul.f32 0.03125, %v79_v9 }
  0xcb   :  { %v86_v11 = vadd.f32 1e-05, %v84_v10 }
  0xcc   :  { %v82_v12 = vpop.xlane.xlu0 %81 }
  0xcd   :  { %1434 = vrsqrt.f32 %v86_v11  ;;  %v85_v13 = vmul.f32 0.03125, %v82_v12 }
  0xcf   :  { %v87_v14 = vadd.f32 1e-05, %v85_v13 }
  0xd1   :  { %1436 = vrsqrt.f32 %v87_v14 }
  0xd7   :  { %v1435_v15 = vpop.eup %1434 }
  0xd8   :  { %v90_v16 = vmul.f32 %v1435_v15, %v1691_v0 }
  0xda   :  { %v97_v20 = vmul.f32 %v1210_v18, %v90_v16 }
  0xdb   :  { %v1437_v17 = vpop.eup %1436 }
  0xdc   :  { %v91_v19 = vmul.f32 %v1437_v17, %v1693_v1 }
  0xde   :  { %v98_v21 = vmul.f32 %v1210_v18, %v91_v19 }
  0xe0   :  { %v99_v22 = vpack.c.bf16 %v98_v21, %v97_v20  ;;  %v267_v20 = vld [vmem:[#allocation5] sm:$0xff] }
  0xe2   :  { %1280 = vmatmul.mubr.msk.bf16.vlgmr.msra.gmra.mrb[0].mxu1 %vm76_vm0, %v99_v22  ;;  %v268_v22 = vld [vmem:[#allocation5 + $0x8] sm:$0xff] }
  0xe3   :  { %1285 = vmatprep.mubr.msk.bf16.mxu1 %vm1584_vm1, %v1583_v7 }
 0x1b5   :  { %v1726_v24 = vpop.f32.mrb[0].mxu1 }
 0x1b6   :  { %167 = vrot.lane.b32.xlu1 %v1726_v24, %s1581_s0  ;;  %v1281_v26 = vpop.f32.mrb[1].mxu1  ;;  %v164_v27 = vmul.f32 %v160_v23, %v1726_v24 }
 0x1b7   :  { %v1734_v28 = vpop.f32.mrb[2].mxu1 }
 0x1b8   :  { %v1282_v29 = vpop.f32.mrb[3].mxu1  ;;  %v165_v30 = vmul.f32 %v162_v25, %v1734_v28  ;;  %v1739_v31 = vpack.i.bf16 %v1734_v28, %v1726_v24  ;;  %v263_v32 = vpack.c.bf16 %v1734_v28, %v1726_v24 }
 0x1ba   :  { %170 = vrot.lane.b32.xlu1 %v1734_v28, %s1581_s0 }
 0x1be   :  { %181 = vrot.lane.b32.xlu1 %v160_v23, %s1585_s9 }
 0x1c2   :  { %183 = vrot.lane.b32.xlu1 %v162_v25, %s1585_s9 }
 0x1c6   :  { %201 = vrot.lane.b32.xlu1 %v161_v33, %s1586_s12 }
 0x228   :  { %v168_v34 = vpop.permute.xlu1 %167 }
 0x229   :  { %v169_v35 = vsel %vm166_vm2, %v168_v34, %v1726_v24 }
 0x22a   :  { %173 = vrot.lane.b32.xlu0 %v169_v35, %s1581_s0 }
 0x22c   :  { %v171_v36 = vpop.permute.xlu1 %170 }
 0x22d   :  { %v172_v37 = vsel %vm166_vm2, %v171_v36, %v1734_v28 }
 0x22e   :  { %175 = vrot.lane.b32.xlu1 %v172_v37, %s1581_s0 }
 0x230   :  { %v182_v39 = vpop.permute.xlu1 %181 }
 0x232   :  { %203 = vrot.lane.b32.xlu1 %v163_v38, %s1586_s12 }
 0x234   :  { %v184_v40 = vpop.permute.xlu1 %183 }
 0x238   :  { %v202_v41 = vpop.permute.xlu1 %201 }
 0x29c   :  { %v174_v42 = vpop.permute.xlu0 %173 }
 0x29d   :  { %v177_v43 = vsel %vm166_vm2, %v174_v42, %v1726_v24 }
 0x29e   :  { %v187_v44 = vmul.f32 %v182_v39, %v177_v43  ;;  %v207_v47 = vmul.f32 %v202_v41, %v177_v43 }
 0x2a0   :  { %191 = vrot.lane.b32.xlu1 %v187_v44, %s1587_s15  ;;  %v176_v45 = vpop.permute.xlu1 %175 }
 0x2a1   :  { %v178_v46 = vsel %vm166_vm2, %v176_v45, %v1734_v28 }
 0x2a2   :  { %v188_v48 = vmul.f32 %v184_v40, %v178_v46 }
 0x2a4   :  { %211 = vrot.lane.b32.xlu1 %v207_v47, %s1585_s9  ;;  %193 = vrot.lane.b32.xlu0 %v188_v48, %s1587_s15  ;;  %v204_v49 = vpop.permute.xlu1 %203  ;;  %s1593_s15 = smov 32  }
 0x2a5   :  { %v208_v50 = vmul.f32 %v204_v49, %v178_v46 }
 0x2a8   :  { %213 = vrot.lane.b32.xlu0 %v208_v50, %s1585_s9 }
 0x312   :  { %v192_v51 = vpop.permute.xlu1 %191 }
 0x313   :  { %v197_v54 = vadd.f32 %v192_v51, %v164_v27 }
 0x316   :  { %v194_v52 = vpop.permute.xlu0 %193  ;;  %v212_v53 = vpop.permute.xlu1 %211 }
 0x317   :  { %v198_v55 = vadd.f32 %v194_v52, %v165_v30  ;;  %v217_v57 = vadd.f32 %v212_v53, %v197_v54 }
 0x31a   :  { %v214_v56 = vpop.permute.xlu0 %213 }
 0x31b   :  { %v218_v58 = vadd.f32 %v214_v56, %v198_v55 }
 0x31d   :  { %v1395_v59 = vpack.i.bf16 %v218_v58, %v217_v57  ;;  %v239_v60 = vpack.c.bf16 %v218_v58, %v217_v57 }
 0x31f   :  { %1396 = vrot.lane.b32.xlu0 %v1395_v59, %s1588_s1  ;;  %1391 = vrot.lane.b32.xlu1 %v1395_v59, %s1589_s16 }
 0x323   :  { %1401 = vrot.lane.b32.xlu1 %v1395_v59, %s1590_s19  ;;  %270 = vrot.lane.b32.xlu0 %v239_v60, %s1591_s20 }
 0x391   :  { %v1397_v61 = vpop.permute.xlu0 %1396  ;;  %v1392_v62 = vpop.permute.xlu1 %1391 }
 0x392   :  { %v1399_v63 = vunpack.i.h.bf16 %v1397_v61  ;;  %v1398_v2 = vunpack.i.l.bf16 %v1397_v61  ;;  %v1394_v3 = vunpack.i.h.bf16 %v1392_v62  ;;  %v1393_v4 = vunpack.i.l.bf16 %v1392_v62 }
 0x394   :  { %v241_v5 = vpack.c.bf16 %v1399_v63, %v1398_v2  ;;  %v240_v6 = vpack.c.bf16 %v1394_v3, %v1393_v4 }
 0x395   :  { %v1402_v8 = vpop.permute.xlu1 %1401  ;;  %v271_v9 = vpop.permute.xlu0 %270 }
 0x396   :  { %v1404_v10 = vunpack.i.h.bf16 %v1402_v8  ;;  %v1403_v11 = vunpack.i.l.bf16 %v1402_v8  ;;  %v277_v12 = vsel %vm272_vm3, %v271_v9, 0  ;;  %321 = vrot.lane.b32.xlu1 %v240_v6, %s1591_s20  ;;  %371 = vrot.lane.b32.xlu0 %v241_v5, %s1591_s20 }
 0x397   :  { %1284 = vmatpush3.bf16.xpose.msra.mxu1 %v277_v12 }
 0x398   :  { %v242_v13 = vpack.c.bf16 %v1404_v10, %v1403_v11  ;;  %1295 = vmatprep.subr.bf16.mxu1 %v1583_v7 }
 0x39a   :  { %421 = vrot.lane.b32.xlu1 %v242_v13, %s1591_s20 }
 0x39e   :  { %1286 = vmatmul.mubr.msk.bf16.vlgmr.msra.gmra.mrb[4].mxu1 %vm272_vm3, %v239_v60 }
 0x39f   :  { %1297 = vmatprep.mubr.msk.bf16.mxu1 %vm1584_vm1, %v1583_v7 }
 0x408   :  { %v322_v14 = vpop.permute.xlu1 %321  ;;  %v372_v15 = vpop.permute.xlu0 %371 }
 0x409   :  { %v377_v16 = vsel %vm272_vm3, %v372_v15, 0  ;;  %v327_v17 = vsel %vm272_vm3, %v322_v14, 0 }
 0x40a   :  { %1290 = vmatpush3.bf16.xpose.msra.mxu0 %v327_v17  ;;  %1296 = vmatpush3.bf16.xpose.msra.mxu1 %v377_v16 }
 0x40b   :  { %1301 = vmatprep.subr.bf16.mxu0 %v1583_v7  ;;  %1307 = vmatprep.subr.bf16.mxu1 %v1583_v7 }
 0x40c   :  { %v422_v18 = vpop.permute.xlu1 %421 }
 0x40d   :  { %v427_v19 = vsel %vm272_vm3, %v422_v18, 0 }
 0x411   :  { %1292 = vmatmul.mubr.msk.bf16.vlgmr.msra.gmra.mrb[0].mxu0 %vm272_vm3, %v240_v6  ;;  %1298 = vmatmul.mubr.msk.bf16.vlgmr.msra.gmra.mrb[8].mxu1 %vm272_vm3, %v241_v5 }
 0x412   :  { %1302 = vmatpush3.bf16.xpose.msra.mxu0 %v427_v19  ;;  %1303 = vmatprep.mubr.msk.bf16.mxu0 %vm1584_vm1, %v1583_v7 }
 0x413   :  { %1313 = vmatprep.subr.bf16.mxu0 %v1583_v7  ;;  %1309 = vmatprep.mubr.msk.bf16.mxu1 %vm1584_vm1, %v1583_v7 }
 0x419   :  { %1304 = vmatmul.mubr.msk.bf16.vlgmr.msra.gmra.mrb[4].mxu0 %vm272_vm3, %v242_v13 }
 0x41a   :  { %1315 = vmatprep.mubr.msk.bf16.mxu0 %vm1584_vm1, %v1583_v7 }
 0x471   :  { %v313_v21 = vpop.f32.mrb[4].mxu1 }
 0x472   :  { %v1788_v23 = vadd.f32 %v313_v21, %v267_v20  ;;  %v1287_v25 = vpop.f32.mrb[5].mxu1 }
 0x473   :  { %v316_v26 = vpop.f32.mrb[6].mxu1 }
 0x474   :  { %v317_v27 = vadd.f32 %v316_v26, %v268_v22  ;;  %v1288_v29 = vpop.f32.mrb[7].mxu1  ;;  %v471_v30 = vsel %vm470_vm4, %v1788_v23, -inf }
 0x475   :  { %472 = vmax.xlane.f32.xlu0 %v471_v30 }
 0x476   :  { %v474_v33 = vsel %vm470_vm4, %v317_v27, -inf }
 0x477   :  { %475 = vmax.xlane.f32.xlu1 %v474_v33 }
 0x4e4   :  { %v363_v34 = vpop.f32.mrb[0].mxu0  ;;  %v413_v35 = vpop.f32.mrb[8].mxu1 }
 0x4e5   :  { %v364_v36 = vadd.f32 %v363_v34, %v267_v20  ;;  %v414_v37 = vadd.f32 %v413_v35, %v267_v20  ;;  %v1293_v38 = vpop.f32.mrb[1].mxu0  ;;  %v1299_v39 = vpop.f32.mrb[9].mxu1 }
 0x4e6   :  { %v366_v40 = vpop.f32.mrb[2].mxu0  ;;  %v416_v41 = vpop.f32.mrb[10].mxu1 }
 0x4e7   :  { %v1793_v42 = vadd.f32 %v366_v40, %v268_v22  ;;  %v1294_v43 = vpop.f32.mrb[3].mxu0  ;;  %v1300_v44 = vpop.f32.mrb[11].mxu1  ;;  %v477_v45 = vsel %vm470_vm4, %v364_v36, -inf  ;;  %v483_v46 = vsel %vm470_vm4, %v414_v37, -inf  ;;  %v1797_v47 = vadd.f32 %v416_v41, %v268_v22 }
 0x4e8   :  { %478 = vmax.xlane.f32.xlu0 %v477_v45  ;;  %484 = vmax.xlane.f32.xlu1 %v483_v46 }
 0x4e9   :  { %v480_v48 = vsel %vm470_vm4, %v1793_v42, -inf  ;;  %v486_v56 = vsel %vm470_vm4, %v1797_v47, -inf }
 0x4ec   :  { %v463_v49 = vpop.f32.mrb[4].mxu0  ;;  %481 = vmax.xlane.f32.xlu0 %v480_v48 }
 0x4ed   :  { %v464_v50 = vadd.f32 %v463_v49, %v267_v20  ;;  %v1305_v51 = vpop.f32.mrb[5].mxu0 }
 0x4ee   :  { %v466_v52 = vpop.f32.mrb[6].mxu0 }
 0x4ef   :  { %v1801_v53 = vadd.f32 %v466_v52, %v268_v22  ;;  %v1306_v54 = vpop.f32.mrb[7].mxu0  ;;  %v489_v55 = vsel %vm470_vm4, %v464_v50, -inf }
 0x4f0   :  { %490 = vmax.xlane.f32.xlu1 %v489_v55  ;;  %487 = vmax.xlane.f32.xlu0 %v486_v56 }
 0x4f1   :  { %v492_v57 = vsel %vm470_vm4, %v1801_v53, -inf }
 0x4f4   :  { %493 = vmax.xlane.f32.xlu0 %v492_v57 }
 0x501   :  { %1406 = vrot.lane.b32.xlu1 %v1739_v31, %s1589_s16 }
 0x502   :  { %v473_v63 = vpop.xlane.xlu0 %472 }
 0x503   :  { %v495_v25 = vsub.f32 %v1788_v23, %v473_v63 }
 0x504   :  { %v476_v58 = vpop.xlane.xlu1 %475 }
 0x505   :  { %1416 = vrot.lane.b32.xlu1 %v1739_v31, %s1590_s19  ;;  %v496_v59 = vsub.f32 %v317_v27, %v476_v58  ;;  %v503_v26 = vmul.f32 1.442695, %v495_v25 }
 0x507   :  { %v505_v60 = vmul.f32 1.442695, %v496_v59 }
 0x509   :  { %1438 = vpow2.f32 %v505_v60 }
 0x50a   :  { %1411 = vrot.lane.b32.xlu0 %v1739_v31, %s1588_s1 }
 0x50e   :  { %564 = vrot.lane.b32.xlu0 %v263_v32, %s1581_s0 }
 0x513   :  { %v1818_v61 = vpop.eup %1438 }
 0x514   :  { %v522_v62 = vsel %vm470_vm4, %v1818_v61, 0.0 }
 0x52d   :  { %523 = vadd.xlane.f32.xlu0 %v522_v62 }
 0x575   :  { %v479_v2 = vpop.xlane.xlu0 %478  ;;  %v485_v3 = vpop.xlane.xlu1 %484 }
 0x576   :  { %v497_v4 = vsub.f32 %v364_v36, %v479_v2  ;;  %v499_v31 = vsub.f32 %v414_v37, %v485_v3 }
 0x578   :  { %v507_v5 = vmul.f32 1.442695, %v497_v4  ;;  %v511_v6 = vmul.f32 1.442695, %v499_v31 }
 0x579   :  { %v482_v8 = vpop.xlane.xlu0 %481 }
 0x57a   :  { %1440 = vpow2.f32 %v507_v5  ;;  %v498_v27 = vsub.f32 %v1793_v42, %v482_v8 }
 0x57b   :  { %1442 = vpow2.f32 %v511_v6 }
 0x57c   :  { %v509_v30 = vmul.f32 1.442695, %v498_v27 }
 0x57d   :  { %v491_v24 = vpop.xlane.xlu1 %490  ;;  %v488_v28 = vpop.xlane.xlu0 %487 }
 0x57e   :  { %v501_v32 = vsub.f32 %v464_v50, %v491_v24  ;;  %v500_v33 = vsub.f32 %v1797_v47, %v488_v28 }
 0x580   :  { %v515_v9 = vmul.f32 1.442695, %v501_v32  ;;  %v513_v36 = vmul.f32 1.442695, %v500_v33  ;;  %v762_v33 = vld [vmem:[#allocation7 + $0xc] sm:$0xf] }
 0x581   :  { %v1407_v10 = vpop.permute.xlu1 %1406  ;;  %v494_v11 = vpop.xlane.xlu0 %493 }
 0x582   :  { %1444 = vpow2.f32 %v515_v9  ;;  %v1409_v12 = vunpack.i.h.bf16 %v1407_v10  ;;  %v1408_v13 = vunpack.i.l.bf16 %v1407_v10  ;;  %v502_v37 = vsub.f32 %v1801_v53, %v494_v11 }
 0x583   :  { %1446 = vpow2.f32 %v503_v26 }
 0x584   :  { %v1822_v14 = vpop.eup %1440  ;;  %v264_v15 = vpack.c.bf16 %v1409_v12, %v1408_v13  ;;  %1448 = vpow2.f32 %v509_v30  ;;  %v517_v39 = vmul.f32 1.442695, %v502_v37 }
 0x585   :  { %v1412_v16 = vpop.permute.xlu0 %1411  ;;  %v525_v17 = vsel %vm470_vm4, %v1822_v14, 0.0  ;;  %v1826_v18 = vpop.eup %1442  ;;  %1450 = vpow2.f32 %v513_v36 }
 0x586   :  { %612 = vrot.lane.b32.xlu1 %v264_v15, %s1581_s0  ;;  %526 = vadd.xlane.f32.xlu0 %v525_v17  ;;  %v531_v20 = vsel %vm470_vm4, %v1826_v18, 0.0  ;;  %v1417_v29 = vpop.permute.xlu1 %1416  ;;  %1452 = vpow2.f32 %v517_v39  ;;  %v1414_v47 = vunpack.i.h.bf16 %v1412_v16  ;;  %v1413_v48 = vunpack.i.l.bf16 %v1412_v16  ;;  %v759_v16 = vld [vmem:[#allocation7] sm:$0xf] }
 0x587   :  { %v1419_v34 = vunpack.i.h.bf16 %v1417_v29  ;;  %v1418_v35 = vunpack.i.l.bf16 %v1417_v29  ;;  %v768_v17 = vsel %vm766_vm5, %v759_v16, 0 }
 0x588   :  { %v265_v49 = vpack.c.bf16 %v1414_v47, %v1413_v48 }
 0x589   :  { %v565_v19 = vpop.permute.xlu0 %564  ;;  %v266_v38 = vpack.c.bf16 %v1419_v34, %v1418_v35 }
 0x58a   :  { %532 = vadd.xlane.f32.xlu0 %v531_v20  ;;  %1308 = vmatpush3.bf16.msra.mxu1 %v565_v19 }
 0x58b   :  { %1319 = vmatprep.subr.bf16.mxu1 %v1583_v7 }
 0x58c   :  { %v1832_v21 = vpop.eup %1444 }
 0x58d   :  { %v537_v22 = vsel %vm470_vm4, %v1832_v21, 0.0  ;;  %v1447_v23 = vpop.eup %1446 }
 0x58e   :  { %538 = vadd.xlane.f32.xlu0 %v537_v22  ;;  %v519_v40 = vsel %vm470_vm4, %v1447_v23, 0.0  ;;  %v1449_v41 = vpop.eup %1448 }
 0x58f   :  { %v528_v42 = vsel %vm470_vm4, %v1449_v41, 0.0  ;;  %v1451_v43 = vpop.eup %1450 }
 0x590   :  { %v534_v44 = vsel %vm470_vm4, %v1451_v43, 0.0  ;;  %v1453_v45 = vpop.eup %1452 }
 0x591   :  { %v540_v46 = vsel %vm470_vm4, %v1453_v45, 0.0 }
 0x5a4   :  { %708 = vrot.lane.b32.xlu0 %v266_v38, %s1581_s0  ;;  %v909_v38 = vsel %vm766_vm5, %v762_v33, 0 }
 0x5aa   :  { %520 = vadd.xlane.f32.xlu1 %v519_v40 }
 0x5ae   :  { %529 = vadd.xlane.f32.xlu1 %v528_v42 }
 0x5b2   :  { %535 = vadd.xlane.f32.xlu1 %v534_v44 }
 0x5b6   :  { %541 = vadd.xlane.f32.xlu1 %v540_v46 }
 0x5ba   :  { %v524_v51 = vpop.xlane.xlu0 %523 }
 0x5bb   :  { %1454 = vrcp.f32 %v524_v51 }
 0x5c5   :  { %v1455_v58 = vpop.eup %1454 }
 0x5c6   :  { %v552_v60 = vmul.f32 %v1455_v58, %v1818_v61 }
 0x5c7   :  { %660 = vrot.lane.b32.xlu1 %v265_v49, %s1581_s0 }
 0x5f8   :  { %v613_v50 = vpop.permute.xlu1 %612 }
 0x5f9   :  { %1314 = vmatpush3.bf16.msra.mxu0 %v613_v50 }
 0x5fa   :  { %1325 = vmatprep.subr.bf16.mxu0 %v1583_v7 }
 0x613   :  { %v527_v52 = vpop.xlane.xlu0 %526 }
 0x617   :  { %v533_v54 = vpop.xlane.xlu0 %532 }
 0x61b   :  { %v539_v56 = vpop.xlane.xlu0 %538 }
 0x61f   :  { %v709_v32 = vpop.permute.xlu0 %708 }
 0x637   :  { %v521_v53 = vpop.xlane.xlu1 %520 }
 0x638   :  { %1456 = vrcp.f32 %v521_v53 }
 0x639   :  { %1458 = vrcp.f32 %v527_v52 }
 0x63b   :  { %v530_v55 = vpop.xlane.xlu1 %529 }
 0x63c   :  { %1460 = vrcp.f32 %v530_v55 }
 0x63d   :  { %1462 = vrcp.f32 %v533_v54 }
 0x63f   :  { %v536_v57 = vpop.xlane.xlu1 %535 }
 0x640   :  { %1464 = vrcp.f32 %v536_v57 }
 0x641   :  { %1466 = vrcp.f32 %v539_v56 }
 0x642   :  { %v1457_v59 = vpop.eup %1456 }
 0x643   :  { %v551_v62 = vmul.f32 %v1457_v59, %v1447_v23  ;;  %v542_v63 = vpop.xlane.xlu1 %541  ;;  %v1459_v2 = vpop.eup %1458 }
 0x644   :  { %1468 = vrcp.f32 %v542_v63  ;;  %v553_v31 = vmul.f32 %v1459_v2, %v1822_v14 }
 0x645   :  { %v559_v3 = vpack.c.bf16 %v552_v60, %v551_v62 }
 0x646   :  { %v1461_v4 = vpop.eup %1460 }
 0x647   :  { %v554_v5 = vmul.f32 %v1461_v4, %v1449_v41  ;;  %1310 = vmatmul.mubr.msk.bf16.vlgmr.msra.gmra.mrb[12].mxu1 %vm470_vm4, %v559_v3  ;;  %v661_v6 = vpop.permute.xlu1 %660  ;;  %v1463_v8 = vpop.eup %1462 }
 0x648   :  { %1320 = vmatpush3.bf16.msra.mxu1 %v661_v6  ;;  %1321 = vmatprep.mubr.msk.bf16.mxu1 %vm1584_vm1, %v1583_v7  ;;  %v555_v28 = vmul.f32 %v1463_v8, %v1826_v18  ;;  %v760_v18 = vld [vmem:[#allocation7 + $0x4] sm:$0xf] }
 0x649   :  { %v560_v24 = vpack.c.bf16 %v554_v5, %v553_v31  ;;  %1331 = vmatprep.subr.bf16.mxu1 %v1583_v7  ;;  %v815_v19 = vsel %vm766_vm5, %v760_v18, 0 }
 0x64a   :  { %v1465_v61 = vpop.eup %1464 }
 0x64b   :  { %v556_v9 = vmul.f32 %v1465_v61, %v1451_v43  ;;  %1316 = vmatmul.mubr.msk.bf16.vlgmr.msra.gmra.mrb[8].mxu0 %vm470_vm4, %v560_v24  ;;  %v1467_v10 = vpop.eup %1466 }
 0x64c   :  { %1326 = vmatpush3.bf16.msra.mxu0 %v709_v32  ;;  %1327 = vmatprep.mubr.msk.bf16.mxu0 %vm1584_vm1, %v1583_v7  ;;  %v557_v13 = vmul.f32 %v1467_v10, %v1832_v21  ;;  %v761_v21 = vld [vmem:[#allocation7 + $0x8] sm:$0xf] }
 0x64d   :  { %v561_v11 = vpack.c.bf16 %v556_v9, %v555_v28  ;;  %1337 = vmatprep.subr.bf16.mxu0 %v1583_v7  ;;  %v862_v29 = vsel %vm766_vm5, %v761_v21, 0  ;;  %v1592_v21 = vmov 0  }
 0x64e   :  { %v1469_v12 = vpop.eup %1468 }
 0x64f   :  { %v558_v14 = vmul.f32 %v1469_v12, %v1453_v45  ;;  %1322 = vmatmul.mubr.msk.bf16.vlgmr.msra.gmra.mrb[16].mxu1 %vm470_vm4, %v561_v11 }
 0x650   :  { %1333 = vmatprep.mubr.msk.bf16.mxu1 %vm1584_vm1, %v1583_v7  ;;  %1332 = vmatpush3.bf16.msra.mxu1 %v768_v17 }
 0x651   :  { %v562_v15 = vpack.c.bf16 %v558_v14, %v557_v13  ;;  %1343 = vmatprep.subr.bf16.mxu1 %v1583_v7 }
 0x653   :  { %1328 = vmatmul.mubr.msk.bf16.vlgmr.msra.gmra.mrb[12].mxu0 %vm470_vm4, %v562_v15 }
 0x654   :  { %1339 = vmatprep.mubr.msk.bf16.mxu0 %vm1584_vm1, %v1583_v7  ;;  %1338 = vmatpush3.bf16.msra.mxu0 %v815_v19  ;;  %v1427_v19 = vld [vmem:[%s1970_s6 + $0x14] ss:$8 sps:$4 sm:$0xff]  }
 0x655   :  { %1349 = vmatprep.subr.bf16.mxu0 %v1583_v7 }
 0x71a   :  { %v604_v20 = vpop.f32.mrb[12].mxu1 }
 0x71b   :  { %v1311_v22 = vpop.f32.mrb[13].mxu1 }
 0x71c   :  { %v607_v25 = vpop.f32.mrb[14].mxu1 }
 0x71d   :  { %v755_v26 = vpack.c.bf16 %v607_v25, %v604_v20  ;;  %v1312_v27 = vpop.f32.mrb[15].mxu1  ;;  %v1425_v20 = vld [vmem:[%s1970_s6 + $0x10] ss:$8 sps:$4 sm:$0xff]  }
 0x71e   :  { %v652_v30 = vpop.f32.mrb[8].mxu0 }
 0x71f   :  { %v1317_v34 = vpop.f32.mrb[9].mxu0  ;;  %1334 = vmatmul.mubr.msk.bf16.vlgmr.msra.gmra.mrb[20].mxu1 %vm272_vm3, %v755_v26 }
 0x720   :  { %v655_v35 = vpop.f32.mrb[10].mxu0  ;;  %1344 = vmatpush3.bf16.msra.mxu1 %v862_v29  ;;  %1345 = vmatprep.mubr.msk.bf16.mxu1 %vm1584_vm1, %v1583_v7 }
 0x721   :  { %v756_v36 = vpack.c.bf16 %v655_v35, %v652_v30  ;;  %v1318_v37 = vpop.f32.mrb[11].mxu0 }
 0x722   :  { %v700_v39 = vpop.f32.mrb[16].mxu1 }
 0x723   :  { %v1323_v23 = vpop.f32.mrb[17].mxu1  ;;  %1340 = vmatmul.mubr.msk.bf16.vlgmr.msra.gmra.mrb[16].mxu0 %vm272_vm3, %v756_v36  ;;  %v1226_v36 = vld [vmem:[%s1967_s3 + $0x1] ss:$0 sm:$0xff] }
 0x724   :  { %v703_v40 = vpop.f32.mrb[18].mxu1  ;;  %1350 = vmatpush3.bf16.msra.mxu0 %v909_v38  ;;  %1351 = vmatprep.mubr.msk.bf16.mxu0 %vm1584_vm1, %v1583_v7 }
 0x725   :  { %v757_v41 = vpack.c.bf16 %v703_v40, %v700_v39  ;;  %v1324_v42 = vpop.f32.mrb[19].mxu1  ;;  %1355 = vmatprep.subr.bf16.mxu0 %v1583_v7  ;;  %v1428_v40 = vld [vmem:[%s1971_s7] sm:$0xff]  }
 0x726   :  { %v748_v43 = vpop.f32.mrb[12].mxu0  ;;  %v1430_v42 = vld [vmem:[%s1971_s7 + $0x10] sm:$0xff]  }
 0x727   :  { %v1329_v44 = vpop.f32.mrb[13].mxu0  ;;  %1346 = vmatmul.mubr.msk.bf16.vlgmr.msra.gmra.mrb[24].mxu1 %vm272_vm3, %v757_v41  ;;  %v1429_v41 = vld [vmem:[%s1971_s7 + $0x8] sm:$0xff]  }
 0x728   :  { %v751_v45 = vpop.f32.mrb[14].mxu0  ;;  %1051 = vmatprep.mubr.bf16.mxu1 %v1592_v21  ;;  %v1432_v44 = vld [vmem:[%s1971_s7 + $0x20] sm:$0xff]  }
 0x729   :  { %v758_v46 = vpack.c.bf16 %v751_v45, %v748_v43  ;;  %v1330_v47 = vpop.f32.mrb[15].mxu0  ;;  %v1431_v43 = vld [vmem:[%s1971_s7 + $0x18] sm:$0xff]   ;;  %v1433_v45 = vld [vmem:[%s1971_s7 + $0x28] sm:$0xff]   ;;  %s1594_s7 = smov [#allocation8]  }
 0x72a   :  { %s1197_s1 = sshll.u32 %s1594_s7, 4  ;;  %s1198_s1 = int_to_ptr.vmem [resolvable:$true] %s1197_s1 }
 0x72b   :  { %1352 = vmatmul.mubr.msk.bf16.vlgmr.msra.gmra.mrb[20].mxu0 %vm272_vm3, %v758_v46  ;;  %s1548_s16 = scalar_lea.vmem %s1198_s1, 256  ;;  %p1553_p11 = scmp.lt.s32.totalorder %s1198_s1, %s1198_s1 }
 0x72c   :  { %1367 = vmatprep.mubr.msk.bf16.mxu0 %vm1584_vm1, %v1583_v7  ;;  %1356 = vmatpush3.bf16.msra.mxu0 %v1428_v40  ;;  %p1549_p10 = scmp.ne.s32.totalorder %s1198_s1, %s1548_s16  ;;  %p1554_p12 = scmp.lt.s32.totalorder %s1548_s16, %s1548_s16 }
 0x72d   :  { %1357 = vmatprep.subr.bf16.mxu0 %v1583_v7 }
 0x72e   :  { %p1555_p13 = por %p1554_p12, %p1553_p11 }
 0x730   :  { %1358 = vmatpush3.bf16.msra.mxu0 %v1429_v41  ;;  %p1556_p0 = pnand %p1555_p13, %p1549_p10 }
 0x731   :  { %1359 = vmatprep.subr.bf16.mxu0 %v1583_v7 }
 0x734   :  { %1360 = vmatpush3.bf16.msra.mxu0 %v1430_v42 }
 0x735   :  { %1361 = vmatprep.subr.bf16.mxu0 %v1583_v7 }
 0x738   :  { %1362 = vmatpush3.bf16.msra.mxu0 %v1431_v43 }
 0x739   :  { %1363 = vmatprep.subr.bf16.mxu0 %v1583_v7 }
 0x73c   :  { %1364 = vmatpush3.bf16.msra.mxu0 %v1432_v44 }
 0x73d   :  { %1365 = vmatprep.subr.bf16.mxu0 %v1583_v7 }
 0x740   :  { %1366 = vmatpush3.bf16.msra.mxu0 %v1433_v45 }
 0x7f2   :  { %v804_v48 = vpop.f32.mrb[20].mxu1 }
 0x7f3   :  { %v1335_v49 = vpop.f32.mrb[21].mxu1  ;;  %v952_v53 = vsel %vm76_vm0, %v804_v48, 0.0 }
 0x7f4   :  { %v807_v50 = vpop.f32.mrb[22].mxu1 }
 0x7f5   :  { %v1336_v51 = vpop.f32.mrb[23].mxu1  ;;  %v959_v58 = vsel %vm76_vm0, %v807_v50, 0.0 }
 0x7f6   :  { %v851_v52 = vpop.f32.mrb[16].mxu0 }
 0x7f7   :  { %v953_v54 = vsel %vm76_vm0, %v851_v52, 0.0  ;;  %v1341_v55 = vpop.f32.mrb[17].mxu0 }
 0x7f8   :  { %v954_v56 = vadd.f32 %v953_v54, %v952_v53  ;;  %v854_v57 = vpop.f32.mrb[18].mxu0 }
 0x7f9   :  { %v960_v59 = vsel %vm76_vm0, %v854_v57, 0.0  ;;  %v1342_v60 = vpop.f32.mrb[19].mxu0 }
 0x7fa   :  { %v961_v62 = vadd.f32 %v960_v59, %v959_v58  ;;  %v898_v63 = vpop.f32.mrb[24].mxu1 }
 0x7fb   :  { %v955_v2 = vsel %vm76_vm0, %v898_v63, 0.0  ;;  %v1347_v3 = vpop.f32.mrb[25].mxu1 }
 0x7fc   :  { %v956_v4 = vadd.f32 %v955_v2, %v954_v56  ;;  %v901_v31 = vpop.f32.mrb[26].mxu1 }
 0x7fd   :  { %v962_v5 = vsel %vm76_vm0, %v901_v31, 0.0  ;;  %v1348_v6 = vpop.f32.mrb[27].mxu1 }
 0x7fe   :  { %v963_v8 = vadd.f32 %v962_v5, %v961_v62  ;;  %v945_v24 = vpop.f32.mrb[20].mxu0 }
 0x7ff   :  { %v957_v61 = vsel %vm76_vm0, %v945_v24, 0.0  ;;  %v1353_v28 = vpop.f32.mrb[21].mxu0 }
 0x800   :  { %v958_v32 = vadd.f32 %v957_v61, %v956_v4  ;;  %v948_v9 = vpop.f32.mrb[22].mxu0 }
 0x801   :  { %v964_v10 = vsel %vm76_vm0, %v948_v9, 0.0  ;;  %v1354_v11 = vpop.f32.mrb[23].mxu0 }
 0x802   :  { %v1891_v12 = vadd.f32 %v958_v32, %v1691_v0  ;;  %v965_v13 = vadd.f32 %v964_v10, %v963_v8  ;;  %v1424_v0 = vld [vmem:[%s1970_s6 + $0x4] ss:$8 sps:$4 sm:$0xff]  }
 0x803   :  { %1019 = vmatprep.subr.bf16.mxu1 %v1424_v0 }
 0x804   :  { %v1894_v14 = vadd.f32 %v965_v13, %v1693_v1  ;;  %v968_v15 = vmul.f32 %v1891_v12, %v1891_v12  ;;  %v1422_v1 = vld [vmem:[%s1970_s6] ss:$8 sps:$4 sm:$0xff]  }
 0x805   :  { %1020 = vmatpush1.bf16.msra.mxu1 %v1422_v1 }
 0x806   :  { %v970_v16 = vsel %vm76_vm0, %v968_v15, 0.0  ;;  %v969_v17 = vmul.f32 %v1894_v14, %v1894_v14  ;;  %1021 = vmatprep.subr.bf16.mxu1 %v1427_v19 }
 0x807   :  { %971 = vadd.xlane.f32.xlu1 %v970_v16 }
 0x808   :  { %v973_v18 = vsel %vm76_vm0, %v969_v17, 0.0 }
 0x809   :  { %974 = vadd.xlane.f32.xlu0 %v973_v18  ;;  %1022 = vmatpush1.bf16.msra.mxu1 %v1425_v20 }
 0x894   :  { %v972_v22 = vpop.xlane.xlu1 %971 }
 0x895   :  { %v976_v25 = vmul.f32 0.03125, %v972_v22 }
 0x896   :  { %v975_v26 = vpop.xlane.xlu0 %974 }
 0x897   :  { %v978_v27 = vadd.f32 1e-05, %v976_v25  ;;  %v977_v29 = vmul.f32 0.03125, %v975_v26 }
 0x899   :  { %1470 = vrsqrt.f32 %v978_v27  ;;  %v979_v30 = vadd.f32 1e-05, %v977_v29 }
 0x89b   :  { %1472 = vrsqrt.f32 %v979_v30 }
 0x8a3   :  { %v1471_v33 = vpop.eup %1470 }
 0x8a4   :  { %v982_v34 = vmul.f32 %v1471_v33, %v1891_v12 }
 0x8a5   :  { %v1473_v35 = vpop.eup %1472 }
 0x8a6   :  { %v983_v37 = vmul.f32 %v1473_v35, %v1894_v14  ;;  %v989_v38 = vmul.f32 %v1226_v36, %v982_v34 }
 0x8a8   :  { %v990_v39 = vmul.f32 %v1226_v36, %v983_v37 }
 0x8aa   :  { %v991_v23 = vpack.c.bf16 %v990_v39, %v989_v38 }
 0x8ac   :  { %1231 = vmatmul.mubr.msk.bf16.vlgmr.msra.gmra.mrb[28].mxu1 %vm76_vm0, %v991_v23 }
 0x97f   :  { %v1053_v46 = vpop.f32.mrb[28].mxu1 }
 0x980   :  { %1080 = vrot.lane.b32.xlu0 %v1053_v46, %s1593_s15  ;;  %v1055_v47 = vpop.f32.mrb[29].mxu1  ;;  %v1232_v50 = vmul.f32 -1.442695, %v1053_v46 }
 0x981   :  { %1082 = vrot.lane.b32.xlu1 %v1055_v47, %s1593_s15  ;;  %v1057_v48 = vpop.f32.mrb[30].mxu1 }
 0x982   :  { %v1059_v49 = vpop.f32.mrb[31].mxu1  ;;  %v1233_v51 = vmul.f32 -1.442695, %v1057_v48  ;;  %1474 = vpow2.f32 %v1232_v50 }
 0x984   :  { %1086 = vrot.lane.b32.xlu0 %v1059_v49, %s1593_s15  ;;  %1476 = vpow2.f32 %v1233_v51 }
 0x985   :  { %1084 = vrot.lane.b32.xlu1 %v1057_v48, %s1593_s15 }
 0x98c   :  { %v1475_v52 = vpop.eup %1474 }
 0x98d   :  { %v1068_v53 = vadd.f32 1.0, %v1475_v52 }
 0x98e   :  { %v1477_v7 = vpop.eup %1476 }
 0x98f   :  { %v1069_v54 = vadd.f32 1.0, %v1477_v7  ;;  %1478 = vrcp.f32 %v1068_v53 }
 0x991   :  { %1480 = vrcp.f32 %v1069_v54 }
 0x999   :  { %v1479_v56 = vpop.eup %1478 }
 0x99a   :  { %v1074_v62 = vmul.f32 %v1479_v56, %v1053_v46 }
 0x99b   :  { %v1481_v58 = vpop.eup %1480 }
 0x99c   :  { %v1075_v63 = vmul.f32 %v1481_v58, %v1057_v48 }
 0x9f2   :  { %v1081_v55 = vpop.permute.xlu0 %1080 }
 0x9f3   :  { %v1083_v57 = vpop.permute.xlu1 %1082 }
 0x9f4   :  { %v1088_v59 = vsel %vm76_vm0, %v1081_v55, %v1083_v57 }
 0x9f5   :  { %v1092_v4 = vmul.f32 %v1088_v59, %v1074_v62 }
 0x9f6   :  { %v1087_v60 = vpop.permute.xlu0 %1086 }
 0x9f7   :  { %v1085_v2 = vpop.permute.xlu1 %1084 }
 0x9f8   :  { %v1089_v3 = vsel %vm76_vm0, %v1085_v2, %v1087_v60 }
 0x9f9   :  { %v1093_v31 = vmul.f32 %v1089_v3, %v1075_v63 }
 0x9fb   :  { %v1094_v5 = vpack.c.bf16 %v1093_v31, %v1092_v4 }
 0x9fd   :  { %1368 = vmatmul.mubr.msk.bf16.vlgmr.msra.gmra.mrb[24].mxu0 %vm1143_vm6, %v1094_v5 }
 0xad0   :  { %v1181_v6 = vpop.f32.mrb[24].mxu0 }
 0xad1   :  { %v1188_v8 = vadd.f32 %v1181_v6, %v1891_v12  ;;  %v1369_v24 = vpop.f32.mrb[25].mxu0 }
 0xad2   :  { %v1184_v61 = vpop.f32.mrb[26].mxu0 }
 0xad3   :  { %1190 = vst.msk [vmem:[#allocation8] sm:$0xff] %vm76_vm0, %v1188_v8  ;;  %v1189_v28 = vadd.f32 %v1184_v61, %v1894_v14  ;;  %v1370_v32 = vpop.f32.mrb[27].mxu0 }
 0xad5   :  { %1191 = vst.msk [vmem:[#allocation8 + $0x8] sm:$0xff] %vm76_vm0, %v1189_v28 }
 0xad6   :  { %1559 = shalt.err (!%p1556_p0)
}
 0xad7   :  { %s1560_s0 = scalar_lea.hbm %s1972_s8, 256 }
 0xad8   :  { %p1561_p1 = scmp.ne.s32.totalorder %s1972_s8, %s1560_s0  ;;  %p1564_p2 = scmp.lt.u32.totalorder %s1560_s0, %s1972_s8 }
 0xada   :  { %p1566_p3 = pnand %p1564_p2, %p1561_p1 }
 0xadc   :  { %1569 = shalt.err (!%p1566_p3)
}
 0xadd   :  { %1203 = dma.vmem_to_hbm [thread:$0]  %s1198_s1, 256, %s1972_s8, [#allocation4], %s1578_s17, %s1578_s17, %s1579_s18  }
 0xade   :  { %1574 = dma.done.wait [#allocation4], 256  }
 0xadf   :  { %1575 = vsyncadd [#allocation4], 4294967040 }
 0xae0   :  { %1207 = vsyncpa [#allocation3], 1 }
 0xae1   :  { %1208 = vsyncpa [#allocation6], 1 }
 0xae2   :  { %1209 = vsyncpa [#allocation4], 1 }

</bundles_post_ra>
